<compile_context>
chip_gen: v7x
topology: tpu7x:2x2x1
jax: 0.10.0
libtpu: 0.0.40
codegen_flags: <defaults>
</compile_context>

<pallas_src>
import jax
import jax.numpy as jnp
from jax.experimental import pallas as pl
from jax.experimental.pallas import tpu as pltpu


def _make_fused_mlp_kernel(num_layers):
    """Builds a kernel over refs = (xT, w_0, p_0, ..., w_{L-1}, p_{L-1}, outT)."""

    def kernel(*refs):
        xT_ref = refs[0]
        oT_ref = refs[-1]
        h = xT_ref[...].astype(jnp.float32)                      # (F0, tm), batch on lanes
        for l in range(num_layers):
            w = refs[1 + 2 * l][...].astype(jnp.float32)          # (F_out, F_in), PyTorch layout
            p = refs[2 + 2 * l][...].astype(jnp.float32)          # (F_out, 3) = [bias|scale|shift]
            h = jnp.dot(w, h, preferred_element_type=jnp.float32)  # (F_out, tm)
            h = jnp.maximum(h + p[:, 0:1], 0.0)                   # bias + ReLU
            h = h * p[:, 1:2] + p[:, 2:3]                         # BatchNorm (eval); Dropout(eval)=id
        oT_ref[...] = h.astype(oT_ref.dtype)

    return kernel


def _pick_tm(M):
    """Batch tile (lane dim). Prefer >=2 large 128-multiple blocks; small M -> full extent."""
    for c in (512, 256, 128):
        if M % c == 0 and M // c >= 2:
            return c
    if M > 1024:
        return 512          # large non-divisible M: pad up to a multiple of 512
    return M                # small M: single full-extent block (always a legal lane dim)


def fold_batchnorm(gamma, beta, running_mean, running_var, eps=1e-5):
    scale = gamma / jnp.sqrt(running_var + eps)
    shift = beta - running_mean * scale
    return scale, shift


def mlp_forward(x, layer_params):
    """Fused eval-mode MLP forward.

    x:            (M, F0)
    layer_params: list of (w(F_out, F_in) [PyTorch nn.Linear layout],
                           b(F_out,), scale(F_out,), shift(F_out,)) per block,
                  with BatchNorm pre-folded via fold_batchnorm().
    Returns (M, F_last), matching the PyTorch module.
    """
    M, F0 = x.shape
    tm = _pick_tm(M)
    m_blocks = pl.cdiv(M, tm)
    M_pad = m_blocks * tm

    xT = x.T                                           # (F0, M): batch on lanes (lane-dense)
    if M_pad != M:
        xT = jnp.pad(xT, ((0, 0), (0, M_pad - M)))

    inputs = [xT]
    in_specs = [pl.BlockSpec((F0, tm), lambda i: (0, i))]
    for (w, b, scale, shift) in layer_params:
        F_out, F_in = w.shape
        p = jnp.stack([b, scale, shift], axis=1)       # (F_out, 3): one DMA instead of three
        inputs += [w, p]
        # Grid-constant index_maps -> weights/params stay resident in VMEM across M steps.
        in_specs += [
            pl.BlockSpec((F_out, F_in), lambda i: (0, 0)),
            pl.BlockSpec((F_out, 3), lambda i: (0, 0)),
        ]
    F_last = layer_params[-1][0].shape[0]

    outT = pl.pallas_call(
        _make_fused_mlp_kernel(len(layer_params)),
        out_shape=jax.ShapeDtypeStruct((F_last, M_pad), x.dtype),
        grid_spec=pltpu.PrefetchScalarGridSpec(
            num_scalar_prefetch=0,
            grid=(m_blocks,),
            in_specs=in_specs,
            out_specs=pl.BlockSpec((F_last, tm), lambda i: (0, i)),
        ),
        compiler_params=pltpu.CompilerParams(
            dimension_semantics=("parallel",),          # shards M blocks across v7x's 2 TCs
            vmem_limit_bytes=32 * 1024 * 1024,
        ),
    )(*inputs)

    if M_pad != M:
        outT = outT[:, :M]
    # Module-facing layout; consumers happy with (F_last, M) can skip this .T.
    return outT.T


if __name__ == "__main__":
    # Shapes implied by the module: batch=8, features=[16, 32, 8].
    features = (16, 32, 8)
    batch = 8
    eps = 1e-5

    n_layers = len(features) - 1
    key = jax.random.PRNGKey(0)
    keys = list(jax.random.split(key, 1 + 6 * n_layers))
    x = jax.random.normal(keys[0], (batch, features[0]), dtype=jnp.float32)

    layer_params = []
    ki = 1
    for in_f, out_f in zip(features[:-1], features[1:]):
        w = jax.random.normal(keys[ki], (out_f, in_f), dtype=jnp.float32) * 0.1  # PyTorch layout
        b = jax.random.normal(keys[ki + 1], (out_f,), dtype=jnp.float32) * 0.1
        gamma = 1.0 + 0.1 * jax.random.normal(keys[ki + 2], (out_f,), jnp.float32)
        beta = 0.1 * jax.random.normal(keys[ki + 3], (out_f,), jnp.float32)
        running_mean = 0.1 * jax.random.normal(keys[ki + 4], (out_f,), jnp.float32)
        running_var = jnp.abs(
            jax.random.normal(keys[ki + 5], (out_f,), jnp.float32)) + 0.5
        ki += 6
        scale, shift = fold_batchnorm(gamma, beta, running_mean, running_var, eps)
        layer_params.append((w, b, scale, shift))

    out = mlp_forward(x, layer_params)
    out = jax.block_until_ready(out)

    # Pure-JAX eval-mode reference.  The Pallas dot uses the default MXU f32
    # path; accepted error vs this HIGHEST-precision reference is <= 2e-3.
    ref = x
    for (w, b, scale, shift) in layer_params:
        ref = jnp.maximum(
            jnp.dot(ref, w.T, precision=jax.lax.Precision.HIGHEST) + b, 0.0)
        ref = ref * scale + shift

    assert out.shape == ref.shape == (batch, features[-1])
    assert out.dtype == ref.dtype
    assert bool(jnp.allclose(out, ref, rtol=2e-3, atol=2e-3))

    print("KERNEL_OK")
</pallas_src>

<mosaic_0001>
module attributes {stable_mosaic.version = 11 : i64} {
  func.func @kernel(%arg0: i32, %arg1: memref<16x8xf32, #tpu.memory_space<vmem>>, %arg2: memref<32x16xf32, #tpu.memory_space<vmem>>, %arg3: memref<32x3xf32, #tpu.memory_space<vmem>>, %arg4: memref<8x32xf32, #tpu.memory_space<vmem>>, %arg5: memref<8x3xf32, #tpu.memory_space<vmem>>, %arg6: memref<8x8xf32, #tpu.memory_space<vmem>>) attributes {dimension_semantics = [#tpu.dimension_semantics<parallel>], iteration_bounds = array<i64: 1>, scalar_prefetch = 0 : i64, scratch_operands = 0 : i64, tpu.core_type = #tpu.core_type<tc>, window_params = [{transform_indices = @transform_0, window_bounds = array<i64: 16, 8>}, {pipeline_mode = #tpu.pipeline_mode<synchronous>, transform_indices = @transform_1, window_bounds = array<i64: 32, 16>}, {pipeline_mode = #tpu.pipeline_mode<synchronous>, transform_indices = @transform_2, window_bounds = array<i64: 32, 3>}, {pipeline_mode = #tpu.pipeline_mode<synchronous>, transform_indices = @transform_3, window_bounds = array<i64: 8, 32>}, {pipeline_mode = #tpu.pipeline_mode<synchronous>, transform_indices = @transform_4, window_bounds = array<i64: 8, 3>}, {transform_indices = @transform_5, window_bounds = array<i64: 8, 8>}]} {
    %c0 = arith.constant 0 : index
    %c0_0 = arith.constant 0 : index
    %0 = vector.load %arg1[%c0, %c0_0] : memref<16x8xf32, #tpu.memory_space<vmem>>, vector<16x8xf32>
    %c0_1 = arith.constant 0 : index
    %c0_2 = arith.constant 0 : index
    %1 = vector.load %arg2[%c0_1, %c0_2] : memref<32x16xf32, #tpu.memory_space<vmem>>, vector<32x16xf32>
    %c0_3 = arith.constant 0 : index
    %c0_4 = arith.constant 0 : index
    %2 = vector.load %arg3[%c0_3, %c0_4] : memref<32x3xf32, #tpu.memory_space<vmem>>, vector<32x3xf32>
    %cst = arith.constant dense<0.000000e+00> : vector<32x8xf32>
    %3 = tpu.matmul %1, %0, %cst {dimension_numbers = #tpu.dot_dimension_numbers<[1], [0], [0], [1], [0, 0, 1, 1], [], []>} : vector<32x16xf32>, vector<16x8xf32>, vector<32x8xf32> -> vector<32x8xf32>
    %4 = vector.extract_strided_slice %2 {offsets = [0, 0], sizes = [32, 1], strides = [1, 1]} : vector<32x3xf32> to vector<32x1xf32>
    %5 = vector.broadcast %4 : vector<32x1xf32> to vector<32x8xf32>
    %6 = arith.addf %3, %5 : vector<32x8xf32>
    %cst_5 = arith.constant 0.000000e+00 : f32
    %7 = vector.broadcast %cst_5 : f32 to vector<32x8xf32>
    %8 = arith.maximumf %6, %7 : vector<32x8xf32>
    %9 = vector.extract_strided_slice %2 {offsets = [0, 1], sizes = [32, 1], strides = [1, 1]} : vector<32x3xf32> to vector<32x1xf32>
    %10 = vector.broadcast %9 : vector<32x1xf32> to vector<32x8xf32>
    %11 = arith.mulf %8, %10 : vector<32x8xf32>
    %12 = vector.extract_strided_slice %2 {offsets = [0, 2], sizes = [32, 1], strides = [1, 1]} : vector<32x3xf32> to vector<32x1xf32>
    %13 = vector.broadcast %12 : vector<32x1xf32> to vector<32x8xf32>
    %14 = arith.addf %11, %13 : vector<32x8xf32>
    %c0_6 = arith.constant 0 : index
    %c0_7 = arith.constant 0 : index
    %15 = vector.load %arg4[%c0_6, %c0_7] : memref<8x32xf32, #tpu.memory_space<vmem>>, vector<8x32xf32>
    %c0_8 = arith.constant 0 : index
    %c0_9 = arith.constant 0 : index
    %16 = vector.load %arg5[%c0_8, %c0_9] : memref<8x3xf32, #tpu.memory_space<vmem>>, vector<8x3xf32>
    %cst_10 = arith.constant dense<0.000000e+00> : vector<8x8xf32>
    %17 = tpu.matmul %15, %14, %cst_10 {dimension_numbers = #tpu.dot_dimension_numbers<[1], [0], [0], [1], [0, 0, 1, 1], [], []>} : vector<8x32xf32>, vector<32x8xf32>, vector<8x8xf32> -> vector<8x8xf32>
    %18 = vector.extract_strided_slice %16 {offsets = [0, 0], sizes = [8, 1], strides = [1, 1]} : vector<8x3xf32> to vector<8x1xf32>
    %19 = vector.broadcast %18 : vector<8x1xf32> to vector<8x8xf32>
    %20 = arith.addf %17, %19 : vector<8x8xf32>
    %cst_11 = arith.constant 0.000000e+00 : f32
    %21 = vector.broadcast %cst_11 : f32 to vector<8x8xf32>
    %22 = arith.maximumf %20, %21 : vector<8x8xf32>
    %23 = vector.extract_strided_slice %16 {offsets = [0, 1], sizes = [8, 1], strides = [1, 1]} : vector<8x3xf32> to vector<8x1xf32>
    %24 = vector.broadcast %23 : vector<8x1xf32> to vector<8x8xf32>
    %25 = arith.mulf %22, %24 : vector<8x8xf32>
    %26 = vector.extract_strided_slice %16 {offsets = [0, 2], sizes = [8, 1], strides = [1, 1]} : vector<8x3xf32> to vector<8x1xf32>
    %27 = vector.broadcast %26 : vector<8x1xf32> to vector<8x8xf32>
    %28 = arith.addf %25, %27 : vector<8x8xf32>
    %c0_12 = arith.constant 0 : index
    %c0_13 = arith.constant 0 : index
    %29 = vector.load %arg6[%c0_12, %c0_13] : memref<8x8xf32, #tpu.memory_space<vmem>>, vector<8x8xf32>
    tpu.vector_store %arg6[%c0_12, %c0_13], %28 {strides = array<i32>} : memref<8x8xf32, #tpu.memory_space<vmem>>, vector<8x8xf32>,
    return
  }
  func.func @transform_0(%arg0: i32) -> (i32, i32) {
    %c0_i32 = arith.constant 0 : i32
    %c0_i32_0 = arith.constant 0 : i32
    return %c0_i32, %arg0 : i32, i32
  }
  func.func @transform_1(%arg0: i32) -> (i32, i32) {
    %c0_i32 = arith.constant 0 : i32
    %c0_i32_0 = arith.constant 0 : i32
    %c0_i32_1 = arith.constant 0 : i32
    return %c0_i32, %c0_i32_0 : i32, i32
  }
  func.func @transform_2(%arg0: i32) -> (i32, i32) {
    %c0_i32 = arith.constant 0 : i32
    %c0_i32_0 = arith.constant 0 : i32
    %c0_i32_1 = arith.constant 0 : i32
    return %c0_i32, %c0_i32_0 : i32, i32
  }
  func.func @transform_3(%arg0: i32) -> (i32, i32) {
    %c0_i32 = arith.constant 0 : i32
    %c0_i32_0 = arith.constant 0 : i32
    %c0_i32_1 = arith.constant 0 : i32
    return %c0_i32, %c0_i32_0 : i32, i32
  }
  func.func @transform_4(%arg0: i32) -> (i32, i32) {
    %c0_i32 = arith.constant 0 : i32
    %c0_i32_0 = arith.constant 0 : i32
    %c0_i32_1 = arith.constant 0 : i32
    return %c0_i32, %c0_i32_0 : i32, i32
  }
  func.func @transform_5(%arg0: i32) -> (i32, i32) {
    %c0_i32 = arith.constant 0 : i32
    %c0_i32_0 = arith.constant 0 : i32
    return %c0_i32, %arg0 : i32, i32
  }
}

</mosaic_0001>

<bundles_post_ra>
// kernel: tpu_custom_call.1
= control target key start
LH: loop header
LB: loop body
LE: loop exit
PB: predicated region body
PF: predicated region fallthrough
CT: control target
= control target key end

     0   :  { %vm51_vm0 = vcmask 130048   ;;  %v391_v4 = vmov 0   ;;  %s480_s0 = inlined_call_operand.vmem [shape: f32[16,8], index: 0, kind: input, shape index: {}]   ;;  %s481_s1 = inlined_call_operand.vmem [shape: f32[32,16], index: 1, kind: input, shape index: {}]   ;;  %s482_s2 = inlined_call_operand.vmem [shape: f32[32,3], index: 2, kind: input, shape index: {}]   ;;  %s483_s3 = inlined_call_operand.vmem [shape: f32[8,32], index: 3, kind: input, shape index: {}]   ;;  %s484_s4 = inlined_call_operand.vmem [shape: f32[8,3], index: 4, kind: input, shape index: {}]   ;;  %s485_s5 = inlined_call_operand.hbm [shape: f32[8,8], index: 5, kind: output, shape index: {}]  }
   0x1   :  { %v21_v0 = vld [vmem:[%s480_s0] sm:$0xff]  ;;  %v22_v1 = vld [vmem:[%s480_s0 + $0x8] sm:$0xff]  ;;  %356 = vset.pattern.permute.xlu1 %v391_v4  ;;  %v29_v5 = vld [vmem:[%s482_s2 + $0x10] sm:$0xff]  ;;  %355 = vset.pattern.permute.xlu0 %v391_v4 }
   0x2   :  { %v23_v2 = vld [vmem:[%s481_s1] sm:$0xff]  ;;  %v338_v3 = vpack.c.bf16 %v22_v1, %v21_v0  ;;  %43 = vperm.xlu1 %356, %v29_v5  }
   0x3   :  { %321 = vmatprep.mubr.msk.f32.mxu0 %vm51_vm0, %v23_v2  ;;  %v27_v6 = vld [vmem:[%s482_s2] sm:$0xff] }
   0x4   :  { %339 = vmatprep.subr.bf16.mxu0 %v338_v3 }
   0x5   :  { %10 = vsyncpa [#allocation3], 0  ;;  %341 = vmatpush3.bf16.msra.mxu0 %v338_v3  ;;  %v24_v7 = vld [vmem:[%s481_s1 + $0x8] sm:$0xff]  ;;  %v30_v8 = vld [vmem:[%s482_s2 + $0x18] sm:$0xff]  ;;  %33 = vperm.xlu0 %355, %v27_v6   ;;  %v392_v12 = vmov 1   ;;  %v393_v13 = vmov 2  }
   0x6   :  { %v25_v9 = vld [vmem:[%s481_s1 + $0x10] sm:$0xff]  ;;  %48 = vperm.xlu1 %356, %v30_v8   ;;  %v28_v10 = vld [vmem:[%s482_s2 + $0x8] sm:$0xff]  ;;  %v26_v11 = vld [vmem:[%s481_s1 + $0x18] sm:$0xff]  ;;  %v394_v14 = vmov 0.0|0.0   ;;  %vm395_vm1 = vmmov 0   ;;  %v396_v15 = vmov 0.0  }
   0x7   :  { %342 = vmatprep.subr.bf16.mxu1 %v394_v14  ;;  %335 = vmatprep.mubr.msk.f32.mxu1 %vm395_vm1, %v396_v15  ;;  %v194_v16 = vld [vmem:[%s484_s4] sm:$0xff]  ;;  %vm200_vm2 = vcmask 261120   ;;  %s397_s13 = smov [#allocation2]   ;;  %vm285_vm3 = vcmask 64512  }
   0x8   :  { %322 = vmatmul.mubr.msk.f32.vlgmr.msra.gmra.mrb[0].mxu0 %vm51_vm0, %v24_v7  ;;  %v193_v51 = vld [vmem:[%s483_s3] sm:$0xff]  ;;  %s293_s14 = sshll.u32 %s397_s13, 4  ;;  %s294_s14 = int_to_ptr.vmem [resolvable:$true] %s293_s14 }
   0x9   :  { %324 = vmatprep.mubr.msk.f32.mxu0 %vm51_vm0, %v25_v9  ;;  %38 = vperm.xlu0 %355, %v28_v10   ;;  %s367_s15 = scalar_lea.vmem %s294_s14, 128  ;;  %p372_p1 = scmp.lt.s32.totalorder %s294_s14, %s294_s14 }
   0xa   :  { %358 = vset.pattern.permute.xlu1 %v392_v12  ;;  %p368_p0 = scmp.ne.s32.totalorder %s294_s14, %s367_s15  ;;  %p373_p2 = scmp.lt.s32.totalorder %s367_s15, %s367_s15 }
   0xb   :  { %158 = vperm.xlu1 %358, %v28_v10  }
   0xc   :  { %325 = vmatmul.mubr.msk.f32.gmra.mrb[2].mxu0 %vm51_vm0, %v26_v11  ;;  %p374_p3 = por %p373_p2, %p372_p1 }
   0xd   :  { %357 = vset.pattern.permute.xlu0 %v392_v12 }
   0xe   :  { %154 = vperm.xlu0 %357, %v27_v6   ;;  %p375_p4 = pnand %p374_p3, %p368_p0 }
   0xf   :  { %359 = vset.pattern.permute.xlu1 %v393_v13 }
  0x10   :  { %174 = vperm.xlu1 %359, %v27_v6  }
  0x12   :  { %360 = vset.pattern.permute.xlu0 %v393_v13 }
  0x13   :  { %178 = vperm.xlu0 %360, %v28_v10  }
  0x14   :  { %361 = vset.pattern.permute.xlu1 %v392_v12 }
  0x15   :  { %162 = vperm.xlu1 %361, %v29_v5  }
  0x17   :  { %182 = vperm.xlu0 %360, %v29_v5  }
  0x19   :  { %166 = vperm.xlu1 %361, %v30_v8  }
  0x1b   :  { %363 = vset.pattern.permute.xlu0 %v391_v4 }
  0x1c   :  { %197 = vperm.xlu0 %363, %v194_v16  }
  0x1d   :  { %362 = vset.pattern.permute.xlu1 %v393_v13 }
  0x1e   :  { %186 = vperm.xlu1 %362, %v30_v8  }
  0x20   :  { %366 = vset.pattern.permute.xlu0 %v393_v13 }
  0x22   :  { %364 = vset.pattern.permute.xlu1 %v392_v12 }
  0x23   :  { %276 = vperm.xlu1 %364, %v194_v16  }
  0x27   :  { %365 = vset.pattern.permute.xlu1 %v393_v13 }
  0x28   :  { %281 = vperm.xlu1 %365, %v194_v16  }
  0x81   :  { %v44_v17 = vpop.permute.xlu1 %43 }
  0x84   :  { %v34_v20 = vpop.permute.xlu0 %33 }
  0x85   :  { %v49_v18 = vpop.permute.xlu1 %48 }
  0x88   :  { %v39_v22 = vpop.permute.xlu0 %38 }
  0x8a   :  { %v159_v19 = vpop.permute.xlu1 %158 }
  0x8d   :  { %v155_v24 = vpop.permute.xlu0 %154 }
  0x8f   :  { %v175_v21 = vpop.permute.xlu1 %174 }
  0x92   :  { %v179_v33 = vpop.permute.xlu0 %178 }
  0x94   :  { %v163_v23 = vpop.permute.xlu1 %162 }
  0x96   :  { %v183_v47 = vpop.permute.xlu0 %182 }
  0x98   :  { %v167_v31 = vpop.permute.xlu1 %166 }
  0x9b   :  { %v198_v52 = vpop.permute.xlu0 %197 }
  0x9d   :  { %v187_v42 = vpop.permute.xlu1 %186 }
  0xa2   :  { %v277_v53 = vpop.permute.xlu1 %276 }
  0xa7   :  { %v282_v58 = vpop.permute.xlu1 %281 }
  0xdb   :  { %v323_v25 = vpop.f32.mrb[0].mxu0 }
  0xdc   :  { %v136_v26 = vadd.f32 %v323_v25, %v39_v22  ;;  %v130_v27 = vpop.f32.mrb[1].mxu0 }
  0xdd   :  { %v131_v28 = vadd.f32 %v130_v27, %v34_v20 }
  0xde   :  { %v150_v29 = vmax.f32 %v136_v26, 0.0 }
  0xdf   :  { %v149_v30 = vmax.f32 %v131_v28, 0.0  ;;  %v326_v32 = vpop.f32.mrb[2].mxu0 }
  0xe0   :  { %v170_v34 = vmul.f32 %v159_v19, %v150_v29  ;;  %v146_v35 = vadd.f32 %v326_v32, %v49_v18  ;;  %v140_v36 = vpop.f32.mrb[3].mxu0 }
  0xe1   :  { %v169_v37 = vmul.f32 %v155_v24, %v149_v30  ;;  %v141_v38 = vadd.f32 %v140_v36, %v44_v17 }
  0xe2   :  { %v190_v39 = vadd.f32 %v179_v33, %v170_v34  ;;  %v152_v40 = vmax.f32 %v146_v35, 0.0 }
  0xe3   :  { %v151_v41 = vmax.f32 %v141_v38, 0.0  ;;  %v189_v43 = vadd.f32 %v175_v21, %v169_v37 }
  0xe4   :  { %v172_v44 = vmul.f32 %v167_v31, %v152_v40 }
  0xe5   :  { %v171_v45 = vmul.f32 %v163_v23, %v151_v41  ;;  %v343_v46 = vpack.c.bf16 %v190_v39, %v189_v43 }
  0xe6   :  { %v192_v48 = vadd.f32 %v187_v42, %v172_v44 }
  0xe7   :  { %v191_v49 = vadd.f32 %v183_v47, %v171_v45  ;;  %344 = vmatpush3.bf16.msra.mxu1 %v343_v46 }
  0xe8   :  { %345 = vmatprep.subr.bf16.mxu1 %v394_v14 }
  0xe9   :  { %v346_v50 = vpack.c.bf16 %v192_v48, %v191_v49 }
  0xeb   :  { %347 = vmatpush3.bf16.msra.mxu1 %v346_v50 }
  0xee   :  { %336 = vmatmul.mubr.msk.f32.vlgmr.msra.gmra.mrb[0].mxu1 %vm200_vm2, %v193_v51 }
 0x1c1   :  { %v270_v54 = vpop.f32.mrb[0].mxu1 }
 0x1c2   :  { %v271_v55 = vadd.f32 %v270_v54, %v198_v52  ;;  %v337_v56 = vpop.f32.mrb[1].mxu1 }
 0x1c4   :  { %v274_v57 = vmax.f32 %v271_v55, 0.0 }
 0x1c6   :  { %v279_v59 = vmul.f32 %v277_v53, %v274_v57 }
 0x1c8   :  { %v284_v60 = vadd.f32 %v282_v58, %v279_v59 }
 0x1ca   :  { %286 = vst.msk [vmem:[#allocation2] sm:$0xff] %vm285_vm3, %v284_v60 }
 0x1cb   :  { %378 = shalt.err (!%p375_p4)
}
 0x1cc   :  { %s379_s17 = scalar_lea.hbm %s485_s5, 128 }
 0x1cd   :  { %p380_p5 = scmp.ne.s32.totalorder %s485_s5, %s379_s17  ;;  %p383_p6 = scmp.lt.u32.totalorder %s379_s17, %s485_s5 }
 0x1cf   :  { %p385_p7 = pnand %p383_p6, %p380_p5 }
 0x1d1   :  { %388 = shalt.err (!%p385_p7)
}
 0x1d2   :  { %296 = dma.vmem_to_hbm [thread:$0]  %s294_s14, 128, %s485_s5, [#allocation3]  }
 0x1d3   :  { %389 = dma.done.wait [#allocation3], 128  }
 0x1d4   :  { %390 = vsyncadd [#allocation3], 4294967168 }
 0x1d5   :  { %300 = vsyncpa [#allocation3], 1 }

</bundles_post_ra>
